<compile_context>
chip_gen: v6e
topology: v6e:2x2x1
jax: 0.10.0
libtpu: 0.0.40
codegen_flags: <defaults>
</compile_context>

<pallas_src>
import jax
import jax.numpy as jnp
from jax.experimental import pallas as pl
from jax.experimental.pallas import tpu as pltpu
import numpy as np

_LANE = 128
_SUBLANE = 8


def _round_up(x, m):
    return (x + m - 1) // m * m


# --------------------------------------------------------------------------- #
# Kernel
# --------------------------------------------------------------------------- #
def _decoder_kernel(x_ref, w_ref, b_ref, o_ref):
    """out[b, s_tile, t_tile] = x[b, s_tile, :] @ w[:, t_tile] + bias[t_tile].

    x_ref: (1, tS, E)   compute dtype (block of the (B, Sp, E) activations)
    w_ref: (E, tN)      compute dtype (pre-transposed weight tile, K-major)
    b_ref: (1, tN)      float32
    o_ref: (1, tS, tN)  output dtype
    """
    acc = jnp.dot(x_ref[0], w_ref[...], preferred_element_type=jnp.float32)
    o_ref[0] = (acc + b_ref[...]).astype(o_ref.dtype)


# --------------------------------------------------------------------------- #
# Tiling / VMEM heuristics
# --------------------------------------------------------------------------- #
def _vmem_budget_bytes():
    """Generation-aware VMEM budget (v5e/v6e: 128 MiB physical, v7x: 64 MiB)."""
    try:
        cap = int(pltpu.get_tpu_info().vmem_capacity_bytes)
    except Exception:
        cap = 0
    if cap <= 0:
        cap = 64 << 20          # conservative fallback == v7x physical VMEM
    return max(32 << 20, min((cap * 3) // 4, 96 << 20))


def _pick_tn(Tp):
    """Largest of {512, 256, 128} that divides the 128-padded output dim."""
    for tn in (4 * _LANE, 2 * _LANE, _LANE):
        if tn <= Tp and Tp % tn == 0:
            return tn
    return _LANE


def _choose_tiles(S, B, E, Tp, in_bytes, out_bytes, budget):
    """Pick (tS, tN): 8/128-aligned tiles whose pipelined footprint fits VMEM."""
    tN = _pick_tn(Tp)
    tS = min(_round_up(max(S, _SUBLANE), _SUBLANE), 1024)

    def need(ts, tn):
        return (2 * ts * E * in_bytes        # x tile, double buffered
                + 2 * E * tn * in_bytes      # weight tile, double buffered
                + 2 * tn * 4                 # bias tile
                + 2 * ts * tn * out_bytes    # output tile, double buffered
                + 2 * ts * tn * 4)           # f32 accumulator + bias-add temp

    while need(tS, tN) > budget and tS > _SUBLANE:
        tS = max(_SUBLANE, (tS // 2) // _SUBLANE * _SUBLANE)
    while need(tS, tN) > budget and tN > _LANE:
        tN //= 2                             # halving preserves divisibility of Tp
    # NOTE: E is not tiled; need(8, 128) only overflows a 32 MiB budget for
    # embedding widths far beyond realistic sizes (E > ~60k).

    # v7x has 2 TensorCores: keep at least 2 parallel grid steps when possible.
    if (-(-Tp // tN)) * B * (-(-S // tS)) < 2 and S > _SUBLANE:
        tS = max(_SUBLANE, _round_up(-(-S // 2), _SUBLANE))
    return tS, tN


# --------------------------------------------------------------------------- #
# Wrappers
# --------------------------------------------------------------------------- #
def prepare_decoder_params(weight, bias, *, compute_dtype=jnp.bfloat16):
    """One-time parameter prep (hoist/cache this outside any step loop).

    Pads T up to a multiple of 128, casts to the compute dtype and transposes
    the weight to (E, Tp) so the kernel contracts on the RHS-major (K) dim.
    """
    T, _ = weight.shape
    cdt = jnp.float32 if compute_dtype is None else compute_dtype
    Tp = _round_up(max(T, _LANE), _LANE)
    w = weight
    b = bias.astype(jnp.float32)
    if Tp != T:
        w = jnp.pad(w, ((0, Tp - T), (0, 0)))
        b = jnp.pad(b, (0, Tp - T))
    w_t = jnp.transpose(w.astype(cdt), (1, 0))       # (E, Tp), K-major
    return w_t, b.reshape(1, Tp)


def decoder_apply(src, w_t, bias2d, *, num_tokens, out_dtype=None,
                  block_s=None, block_n=None):
    """Run the Pallas decoder on pre-prepped params.

    src:    (S, B, E)  activations (torch transformer layout)
    w_t:    (E, Tp)    pre-transposed / padded / cast weight
    bias2d: (1, Tp)    float32 padded bias
    returns (B, S, T)
    """
    S, B, E = src.shape
    Ew, Tp = w_t.shape
    assert Ew == E, (Ew, E)
    T = num_tokens
    cdt = w_t.dtype
    out_dtype = src.dtype if out_dtype is None else out_dtype
    in_bytes = jnp.dtype(cdt).itemsize
    out_bytes = jnp.dtype(out_dtype).itemsize

    budget = _vmem_budget_bytes()
    tS, tN = _choose_tiles(S, B, E, Tp, in_bytes, out_bytes, budget)
    if block_s is not None:
        tS = int(block_s)
        assert tS > 0 and tS % _SUBLANE == 0, tS
    if block_n is not None:
        tN = int(block_n)
        assert tN % _LANE == 0 and Tp % tN == 0, (tN, Tp)

    Sp = _round_up(S, tS)
    nS = Sp // tS
    nT = Tp // tN
    grid = (nT, B, nS)

    # x: fold the (S,B)->(B,S) transpose + compute-dtype cast into one fused
    # wrapper pass over B*S*E elements (cheaper than transposing the B*S*T
    # output, which is what the PyTorch module does).  Only the S tail is padded.
    x = jnp.transpose(src, (1, 0, 2)).astype(cdt)
    if Sp != S:
        x = jnp.pad(x, ((0, 0), (0, Sp - S), (0, 0)))

    flops = 2 * B * Sp * E * Tp
    bytes_accessed = (nT * B * Sp * E * in_bytes        # x re-streamed per T tile
                      + E * Tp * in_bytes + Tp * 4      # weight + bias (once)
                      + B * Sp * Tp * out_bytes)        # output

    out_full = pl.pallas_call(
        _decoder_kernel,
        out_shape=jax.ShapeDtypeStruct((B, Sp, Tp), out_dtype),
        grid_spec=pltpu.PrefetchScalarGridSpec(
            num_scalar_prefetch=0,
            grid=grid,
            in_specs=[
                # x block: one batch row-slab; transpose handled by addressing.
                pl.BlockSpec((1, tS, E), lambda j, b, i: (b, i, 0)),
                # weight tile: constant over the inner (b, i) loops -> DMA'd once.
                pl.BlockSpec((E, tN), lambda j, b, i: (0, j)),
                # bias tile: idem.
                pl.BlockSpec((1, tN), lambda j, b, i: (0, j)),
            ],
            out_specs=pl.BlockSpec((1, tS, tN), lambda j, b, i: (b, i, j)),
        ),
        compiler_params=pltpu.CompilerParams(
            dimension_semantics=("parallel", "parallel", "parallel"),
            vmem_limit_bytes=int(budget),
        ),
        cost_estimate=pl.CostEstimate(
            flops=flops, transcendentals=0, bytes_accessed=bytes_accessed),
    )(x, w_t, bias2d)

    if Sp != S or Tp != T:
        out_full = out_full[:, :S, :T]          # drop seq / lane padding
    return out_full


def decoder_forward(src, weight, bias, *, compute_dtype=jnp.bfloat16,
                    out_dtype=None, block_s=None, block_n=None):
    """Pallas equivalent of _Decoder.forward.

    src:    (S, B, E) float32
    weight: (T, E)    float32 (nn.Linear weight)
    bias:   (T,)      float32
    returns (B, S, T) in out_dtype (defaults to src.dtype).
    Note: compute_dtype=bf16 (default) uses the MXU's bf16 path with f32
    accumulation; pass compute_dtype=jnp.float32 for nn.Linear-exact results.
    """
    w_t, b2 = prepare_decoder_params(weight, bias, compute_dtype=compute_dtype)
    return decoder_apply(src, w_t, b2, num_tokens=weight.shape[0],
                         out_dtype=out_dtype, block_s=block_s, block_n=block_n)


# --------------------------------------------------------------------------- #
# Deterministic params mimicking nn.Linear + orthogonal_ init on the weight.
# --------------------------------------------------------------------------- #
def make_params(key, num_tokens, emb_dim):
    k_w, k_b = jax.random.split(key)
    a = jax.random.normal(k_w, (num_tokens, emb_dim), dtype=jnp.float32)
    if num_tokens < emb_dim:
        q, r = jnp.linalg.qr(a.T)
        q = q * jnp.sign(jnp.diag(r))
        weight = q.T[:num_tokens, :]
    else:
        q, r = jnp.linalg.qr(a)
        q = q * jnp.sign(jnp.diag(r))
        weight = q[:, :emb_dim]
    bound = 1.0 / np.sqrt(emb_dim)
    bias = jax.random.uniform(k_b, (num_tokens,), dtype=jnp.float32,
                              minval=-bound, maxval=bound)
    return weight, bias


if __name__ == "__main__":
    key = jax.random.PRNGKey(0)
    k_src, k_par, k_src2 = jax.random.split(key, 3)

    def reference(src, weight, bias):
        return jnp.transpose(jnp.einsum("sbe,te->sbt", src, weight) + bias,
                             (1, 0, 2))

    # NOTE: at these toy sizes launch overhead dominates; the kernel structure
    # (T tiling, pre-transposed weight, addressing-only transpose) is sized for
    # realistic S*B / E / vocab-sized T.

    # --- config 1: module-native toy sizes -------------------------------- #
    seq, batch, emb_dim, num_tokens = 8, 2, 32, 16
    src = jax.random.normal(k_src, (seq, batch, emb_dim), dtype=jnp.float32)
    weight, bias = make_params(k_par, num_tokens, emb_dim)
    ref = reference(src, weight, bias)

    out_f32 = jax.block_until_ready(
        decoder_forward(src, weight, bias, compute_dtype=jnp.float32))
    assert out_f32.shape == (batch, seq, num_tokens), out_f32.shape
    np.testing.assert_allclose(np.asarray(out_f32), np.asarray(ref),
                               rtol=1e-5, atol=1e-5)

    out_bf16 = jax.block_until_ready(decoder_forward(src, weight, bias))
    assert out_bf16.shape == (batch, seq, num_tokens), out_bf16.shape
    np.testing.assert_allclose(np.asarray(out_bf16), np.asarray(ref),
                               rtol=5e-2, atol=1e-1)

    # --- config 2: exercise multi-tile grid + S/T padding paths ----------- #
    seq2, batch2, emb2, tok2 = 40, 3, 64, 300
    src2 = jax.random.normal(k_src2, (seq2, batch2, emb2), dtype=jnp.float32)
    w2, b2 = make_params(k_par, tok2, emb2)
    ref2 = reference(src2, w2, b2)
    out2 = jax.block_until_ready(
        decoder_forward(src2, w2, b2, compute_dtype=jnp.float32,
                        block_s=16, block_n=128))
    assert out2.shape == (batch2, seq2, tok2), out2.shape
    np.testing.assert_allclose(np.asarray(out2), np.asarray(ref2),
                               rtol=1e-4, atol=1e-4)

    print("KERNEL_OK")
</pallas_src>

<mosaic_0001>
module attributes {stable_mosaic.version = 11 : i64} {
  func.func @_decoder_kernel(%arg0: i32, %arg1: i32, %arg2: i32, %arg3: memref<1x8x32xf32, #tpu.memory_space<vmem>>, %arg4: memref<32x128xf32, #tpu.memory_space<vmem>>, %arg5: memref<1x128xf32, #tpu.memory_space<vmem>>, %arg6: memref<1x8x128xf32, #tpu.memory_space<vmem>>) attributes {dimension_semantics = [#tpu.dimension_semantics<parallel>, #tpu.dimension_semantics<parallel>, #tpu.dimension_semantics<parallel>], iteration_bounds = array<i64: 1, 2, 1>, scalar_prefetch = 0 : i64, scratch_operands = 0 : i64, tpu.core_type = #tpu.core_type<tc>, window_params = [{transform_indices = @transform_0, window_bounds = array<i64: 1, 8, 32>}, {transform_indices = @transform_1, window_bounds = array<i64: 32, 128>}, {transform_indices = @transform_2, window_bounds = array<i64: 1, 128>}, {transform_indices = @transform_3, window_bounds = array<i64: 1, 8, 128>}]} {
    %c0 = arith.constant 0 : index
    %c0_0 = arith.constant 0 : index
    %c0_1 = arith.constant 0 : index
    %0 = vector.load %arg3[%c0, %c0_0, %c0_1] : memref<1x8x32xf32, #tpu.memory_space<vmem>>, vector<1x8x32xf32>
    %1 = vector.shape_cast %0 : vector<1x8x32xf32> to vector<8x32xf32>
    %c0_2 = arith.constant 0 : index
    %c0_3 = arith.constant 0 : index
    %2 = vector.load %arg4[%c0_2, %c0_3] : memref<32x128xf32, #tpu.memory_space<vmem>>, vector<32x128xf32>
    %cst = arith.constant dense<0.000000e+00> : vector<8x128xf32>
    %3 = tpu.matmul %1, %2, %cst {dimension_numbers = #tpu.dot_dimension_numbers<[1], [0], [0], [1], [0, 0, 1, 1], [], []>} : vector<8x32xf32>, vector<32x128xf32>, vector<8x128xf32> -> vector<8x128xf32>
    %c0_4 = arith.constant 0 : index
    %c0_5 = arith.constant 0 : index
    %4 = vector.load %arg5[%c0_4, %c0_5] : memref<1x128xf32, #tpu.memory_space<vmem>>, vector<1x128xf32>
    %5 = vector.broadcast %4 : vector<1x128xf32> to vector<8x128xf32>
    %6 = arith.addf %3, %5 : vector<8x128xf32>
    %c0_6 = arith.constant 0 : index
    %c0_7 = arith.constant 0 : index
    %c0_8 = arith.constant 0 : index
    %7 = vector.load %arg6[%c0_6, %c0_7, %c0_8] : memref<1x8x128xf32, #tpu.memory_space<vmem>>, vector<1x8x128xf32>
    %8 = vector.shape_cast %7 : vector<1x8x128xf32> to vector<8x128xf32>
    %9 = vector.shape_cast %6 : vector<8x128xf32> to vector<1x8x128xf32>
    tpu.vector_store %arg6[%c0_6, %c0_7, %c0_8], %9 {strides = array<i32>} : memref<1x8x128xf32, #tpu.memory_space<vmem>>, vector<1x8x128xf32>,
    return
  }
  func.func @transform_0(%arg0: i32, %arg1: i32, %arg2: i32) -> (i32, i32, i32) {
    %c0_i32 = arith.constant 0 : i32
    %c0_i32_0 = arith.constant 0 : i32
    return %arg1, %arg2, %c0_i32 : i32, i32, i32
  }
  func.func @transform_1(%arg0: i32, %arg1: i32, %arg2: i32) -> (i32, i32) {
    %c0_i32 = arith.constant 0 : i32
    %c0_i32_0 = arith.constant 0 : i32
    return %c0_i32, %arg0 : i32, i32
  }
  func.func @transform_2(%arg0: i32, %arg1: i32, %arg2: i32) -> (i32, i32) {
    %c0_i32 = arith.constant 0 : i32
    %c0_i32_0 = arith.constant 0 : i32
    return %c0_i32, %arg0 : i32, i32
  }
  func.func @transform_3(%arg0: i32, %arg1: i32, %arg2: i32) -> (i32, i32, i32) {
    %c0_i32 = arith.constant 0 : i32
    return %arg1, %arg2, %arg0 : i32, i32, i32
  }
}

</mosaic_0001>

<bundles_post_ra>
// kernel: tpu_custom_call.1
= control target key start
LH: loop header
LB: loop body
LE: loop exit
PB: predicated region body
PF: predicated region fallthrough
CT: control target
= control target key end

     0   :  { %8 = vsyncpa [#allocation3], 0  ;;  %s913_s0 = inlined_call_operand.hbm [shape: f32[2,8,32], index: 0, kind: input, shape index: {}]   ;;  %s914_s1 = inlined_call_operand.hbm [shape: f32[32,128], index: 1, kind: input, shape index: {}]   ;;  %s915_s2 = inlined_call_operand.vmem [shape: f32[1,128], index: 2, kind: input, shape index: {}]   ;;  %s916_s3 = inlined_call_operand.hbm [shape: f32[2,8,128], index: 3, kind: output, shape index: {}]  }
   0x1   :  { %10 = vsyncpa [#allocation3 + $0x1], 0 }
   0x2   :  { %11 = vsyncpa [#allocation6], 0 }
   0x3   :  { %12 = vsyncpa [#allocation4], 0 }
   0x4   :  { %14 = vsyncpa [#allocation4 + $0x1], 0  ;;  %s737_s12 = smov 0   ;;  %s739_s13 = smov 0  }
   0x5   :  { %s741_s14 = smov 0   ;;  %s743_s15 = smov 0  }
   0x6   :  { %s745_s16 = smov 0   ;;  %s747_s17 = smov 0  }
   0x7 LB: > { %s459_s18 = sadd.s32 4294967295, %s708_s17   ;;  %s460_s19 = sadd.s32 4294967294, %s708_s17   ;;  %s708_s17 = sphi %s747_s17, %s20_s17   ;;  %s704_s16 = sphi %s745_s16, %s934_s16   ;;  %s700_s15 = sphi %s743_s15, %s933_s15   ;;  %s696_s14 = sphi %s741_s14, %s932_s14   ;;  %s692_s13 = sphi %s739_s13, %s931_s13   ;;  %s688_s12 = sphi %s737_s12, %s930_s12  }
   0x8   : > { %p61_p0 = scmp.ne.s32.totalorder %s692_s13, %s688_s12  ;;  %p771_p1 = scmp.eq.s32.totalorder %s459_s18, 0 }
   0x9   : > { %p775_p2 = scmp.eq.s32.totalorder %s459_s18, 1  ;;  %p147_p3 = scmp.eq.s32.totalorder %s460_s19, 1 }
   0xa   : > { %p781_p4 = por %p771_p1, %p61_p0  ;;  %p461_p5 = scmp.ge.s32.totalorder %s708_s17, 1 }
   0xb   : > { %p786_p6 = por %p147_p3, %p61_p0  ;;  %p154_p7 = scmp.lt.s32.totalorder %s708_s17, 3 }
   0xc   : > { %s920_s22 = scalar_select %p781_p4, 1, 0 }
   0xd   : > { %s921_s23 = scalar_select %p786_p6, 1, 0 }
   0xe   : > { %p791_p8 = pnand %p461_p5, %p154_p7  ;;  %s710_s25 = smov [#allocation5]  }
   0xf   : > { %s168_s26 = sshll.u32 %s710_s25, 4  ;;  %s35_s28 = sadd.s32 1, %s704_s16  ;;  %s169_s26 = int_to_ptr.vmem [resolvable:$true] %s168_s26 }
  0x10   : > { %p501_p9 = pneg %p791_p8  ;;  %s581_s29 = scalar_lea.vmem %s169_s26, 512 }
  0x11   : > { %p582_p13 = scmp.ne.s32.totalorder %s169_s26, %s581_s29  ;;  %p589_p5 = scmp.lt.s32.totalorder %s169_s26, %s169_s26 }
  0x12   : > { %p800_p11 = pnand %p501_p9, %p771_p1  ;;  %p590_p7 = scmp.lt.s32.totalorder %s581_s29, %s581_s29 }
  0x14   : > { %p572_p12 = pneg %p800_p11  ;;  %p591_p6 = por %p590_p7, %p589_p5 }
  0x16   : > { %p584_p0 = pnand %p582_p13, %p572_p12 }
  0x18   : > { %p585_p3 = pneg %p584_p0 }
  0x1a   : > { %p592_p4 = pnand %p591_p6, %p585_p3 }
  0x1c   : > { %595 = shalt.err (!%p592_p4)
}
  0x1d   : > { %s711_s30 = smov 128   ;;  %s712_s4 = smov 8  }
  0x1e   : > { %504 = dma.hbm_to_vmem [thread:$0]  (!%p800_p11), %s914_s1, 512, %s169_s26, [#allocation6], %s711_s30, %s711_s30, %s712_s4  }
  0x1f   : > { %p37_p6 = scmp.ge.s32.totalorder %s35_s28, 2  ;;  %s48_s7 = sadd.s32 1, %s696_s14 }
  0x20   : > { %p55_p4 = scmp.ne.s32.totalorder %s696_s14, %s692_s13  ;;  %p56_p9 = scmp.eq.s32.totalorder %s708_s17, 0 }
  0x21   : > { %s936_s28 = smov (%p37_p6, %s35_s28), 0  ;;  %p514_p0 = scmp.lt.s32.totalorder %s708_s17, 2 }
  0x22   : > { %p818_p12 = por %p56_p9, %p55_p4  ;;  %p824_p13 = por %p775_p2, %p55_p4 }
  0x23   : > { %s43_s10 = ssub.s32 %s704_s16, %s936_s28  ;;  %s188_s11 = sand.u32 1, %s696_s14  }
  0x24   : > { %p46_p11 = scmp.eq.s32.totalorder %s43_s10, 0  ;;  %s465_s18 = sshll.u32 %s188_s11, 3 }
  0x25   : > { %s466_s25 = sshll.u32 %s704_s16, 7  ;;  %s192_s30 = scalar_lea.vmem [#allocation2], %s465_s18 }
  0x26   : > { %s833_s19 = scalar_select %p46_p11, %s696_s14, %s48_s7  }
  0x27   : > { %s198_s29 = scalar_lea.hbm %s913_s0, %s466_s25  ;;  %s200_s4 = sshll.u32 %s192_s30, 4  ;;  %s201_s4 = int_to_ptr.vmem [resolvable:$true] %s200_s4 }
  0x28   : > { %p841_p2 = pnand %p514_p0, %p818_p12  ;;  %s189_s5 = scalar_lea.sflag [#allocation3], %s188_s11 }
  0x29   : > { %s609_s6 = scalar_lea.vmem %s201_s4, 128  ;;  %s713_s7 = smov [#allocation2]  }
  0x2a   : > { %p598_p3 = pneg %p841_p2  ;;  %p610_p5 = scmp.ne.s32.totalorder %s201_s4, %s609_s6 }
  0x2b   : > { %s614_s10 = sshll.u32 %s713_s7, 4  ;;  %s615_s10 = int_to_ptr.vmem [resolvable:$false] %s614_s10 }
  0x2c   : > { %p612_p7 = pnand %p610_p5, %p598_p3  ;;  %s616_s25 = scalar_lea.vmem %s615_s10, 256 }
  0x2d   : > { %p617_p4 = scmp.lt.s32.totalorder %s201_s4, %s615_s10  ;;  %p618_p9 = scmp.lt.s32.totalorder %s616_s25, %s609_s6 }
  0x2e   : > { %p613_p6 = pneg %p612_p7 }
  0x2f   : > { %p619_p11 = por %p618_p9, %p617_p4 }
  0x31   : > { %p620_p10 = pnand %p619_p11, %p613_p6 }
  0x33   : > { %623 = shalt.err (!%p620_p10)
}
  0x34   : > { %508 = dma.hbm_to_vmem [thread:$0]  (!%p841_p2), %s198_s29, 128, %s201_s4, %s189_s5  }
  0x35   : > { %209 = sbr.rel (%p791_p8) target bundleno = 278 (0x116), region = 32  ;;  %s852_s8 = sand.u32 (!%p791_p8), 1, %s692_s13  }
  0x36   : > { %s468_s11 = sshll.u32 (!%p791_p8), %s852_s8, 3  ;;  %s212_s18 = scalar_lea.sflag (!%p791_p8), [#allocation3], %s852_s8 }
  0x37   : > { %s215_s26 = scalar_lea.vmem (!%p791_p8), [#allocation2], %s468_s11  ;;  %p927_p12 = scmp.ne.s32.totalorder (!%p791_p8), %s920_s22, 0 }
  0x3a   : > { %675 = dma.done.wait (%p927_p12), %s212_s18, 128  }
  0x3b   : > { %677 = vsyncadd (%p927_p12), %s212_s18, 4294967168 }
  0x3c   : > { %679 = dma.done.wait (%p771_p1), [#allocation6], 512  }
  0x3d   : > { %681 = vsyncadd (%p771_p1), [#allocation6], 4294966784  ;;  %v714_v0 = vmov 0.0   ;;  %vm715_vm0 = vmmov 0   ;;  %v252_v1 = vld [vmem:[#allocation5 + $0x18] sm:$0xff]  ;;  %v251_v2 = vld [vmem:[#allocation5 + $0x10] sm:$0xff] }
  0x3e   : > { %482 = vmatprep.subr.mxu0 %v714_v0  ;;  %490 = vmatprep.mubr.msk.f32.mxu0 %vm715_vm0, %v714_v0  ;;  %v250_v3 = vld [vmem:[#allocation5 + $0x8] sm:$0xff]  ;;  %v249_v4 = vld [vmem:[#allocation5] sm:$0xff]  ;;  %v248_v5 = vld [vmem:[%s215_s26] sm:$0xff]  ;;  %vm260_vm1 = vcmask 261120   ;;  %s474_s24 = sshll.u32 %s700_s15, 7  ;;  %s244_s27 = scalar_lea.vmem [#allocation7], %s468_s11 }
  0x3f   : > { %483 = vmatpush3.msra.mxu0 %v252_v1  ;;  %v471_v6 = vld [vmem:[%s915_s2] ss:$0 sm:$0xff]  ;;  %s351_s29 = sshll.u32 %s244_s27, 4  ;;  %s871_s21 = scalar_lea.hbm %s916_s3, %s474_s24  ;;  %s352_s29 = int_to_ptr.vmem [resolvable:$true] %s351_s29 }
  0x40   : > { %484 = vmatprep.subr.mxu0 %v714_v0  ;;  %s336_s5 = scalar_lea.sflag [#allocation4], %s852_s8  ;;  %s624_s6 = scalar_lea.vmem %s352_s29, 128 }
  0x41   : > { %485 = vmatpush3.msra.mxu0 %v251_v2  ;;  %p625_p1 = scmp.ne.s32.totalorder %s352_s29, %s624_s6  ;;  %s716_s7 = smov [#allocation7]  }
  0x42   : > { %486 = vmatprep.subr.mxu0 %v714_v0  ;;  %s628_s15 = sshll.u32 %s716_s7, 4  ;;  %s629_s15 = int_to_ptr.vmem [resolvable:$false] %s628_s15 }
  0x43   : > { %487 = vmatpush3.msra.mxu0 %v250_v3  ;;  %p626_p8 = pnand %p625_p1, %p824_p13  ;;  %s630_s10 = scalar_lea.vmem %s629_s15, 256 }
  0x44   : > { %488 = vmatprep.subr.mxu0 %v714_v0  ;;  %p631_p0 = scmp.lt.s32.totalorder %s352_s29, %s629_s15  ;;  %p632_p2 = scmp.lt.s32.totalorder %s630_s10, %s624_s6 }
  0x45   : > { %489 = vmatpush3.msra.mxu0 %v249_v4  ;;  %p627_p10 = pneg %p626_p8 }
  0x46   : > { %491 = vmatmul.mubr.msk.f32.vlgmr.msra.gmra.mxu0 %vm260_vm1, %v248_v5  ;;  %p633_p3 = por %p632_p2, %p631_p0 }
  0x48   : > { %p634_p5 = pnand %p633_p3, %p627_p10 }
 0x106   : > { %v330_v7 = vpop.f32.mrf.mxu0 }
 0x107   : > { %v331_v8 = vadd.f32 %v471_v6, %v330_v7 }
 0x108   : > { %v492_v9 = vpop.f32.mrf.mxu0 }
 0x109   : > { %334 = vst [vmem:[%s244_s27] sm:$0xff] %v331_v8 }
 0x10a   : > { %637 = shalt.err (!%p634_p5)
}
 0x10b   : > { %s638_s25 = scalar_lea.hbm %s871_s21, 128  ;;  %s642_s18 = scalar_lea.hbm %s916_s3, 256 }
 0x10c   : > { %p639_p7 = scmp.ne.s32.totalorder %s871_s21, %s638_s25  ;;  %p643_p9 = scmp.lt.s32.totalorder %s871_s21, %s916_s3 }
 0x10d   : > { %p644_p11 = scmp.lt.s32.totalorder %s642_s18, %s638_s25 }
 0x10e   : > { %p640_p6 = pnand %p639_p7, %p824_p13 }
 0x10f   : > { %p645_p12 = por %p644_p11, %p643_p9 }
 0x110   : > { %p641_p4 = pneg %p640_p6 }
 0x112   : > { %p646_p1 = pnand %p645_p12, %p641_p4 }
 0x114   : > { %649 = shalt.err (!%p646_p1)
}
 0x115   : > { %499 = dma.vmem_to_hbm [thread:$0]  (%p824_p13), %s352_s29, 128, %s871_s21, %s336_s5  }
 0x116 PF: > { %s363_s22 = sand.u32 1, %s688_s12   ;;  %p928_p8 = scmp.ne.s32.totalorder %s921_s23, 0 }
 0x117   : > { %p929_p10 = scmp.ge.s32.totalorder %s708_s17, 2  ;;  %s364_s24 = scalar_lea.sflag [#allocation4], %s363_s22 }
 0x119   : > { %p510_p0 = pnand %p929_p10, %p928_p8 }
 0x11b   : > { %p511_p2 = pneg %p510_p0 }
 0x11d   : > { %683 = dma.done.wait (%p511_p2), %s364_s24, 128  }
 0x11e   : > { %685 = vsyncadd (%p511_p2), %s364_s24, 4294967168  ;;  %s20_s17 = sadd.s32 1, %s708_s17   ;;  %s930_s12 = smov %s692_s13 }
 0x11f   : > { %p17_p3 = scmp.ge.s32.totalorder %s20_s17, 4   ;;  %s931_s13 = smov %s696_s14 }
 0x120   : > { %s932_s14 = smov %s833_s19  ;;  %s933_s15 = smov %s704_s16 }
 0x121   : > { %s934_s16 = smov %s936_s28  ;;  %19 = sbr.rel (!%p17_p3) target bundleno = 7 (0x7), region = 85 }
 0x126   :  { %369 = vsyncpa [#allocation3], 1 }
 0x127   :  { %371 = vsyncpa [#allocation3 + $0x1], 1 }
 0x128   :  { %372 = vsyncpa [#allocation6], 1 }
 0x129   :  { %373 = vsyncpa [#allocation4], 1 }
 0x12a   :  { %375 = vsyncpa [#allocation4 + $0x1], 1 }

</bundles_post_ra>
